<compile_context>
chip_gen: v7x
topology: tpu7x:2x2x1
jax: 0.10.0
libtpu: 0.0.40
codegen_flags: <defaults>
</compile_context>

<pallas_src>
import functools

import jax
import jax.numpy as jnp
from jax.experimental import pallas as pl
from jax.experimental.pallas import tpu as pltpu

EPS = 1e-5  # PyTorch BatchNorm2d default


def _round_up(x, m):
    return (x + m - 1) // m * m


# ---------------------------------------------------------------------------
# Pallas kernels: bf16 matmul + per-channel shift (+ residual) (+ ReLU).
# BN scale is pre-folded into the weights, so the epilogue is add-only.
# ---------------------------------------------------------------------------
def _mm_shift_kernel(a_ref, w_ref, shift_ref, o_ref, *, relu):
    acc = jnp.dot(a_ref[...], w_ref[...], preferred_element_type=jnp.float32)
    y = acc + shift_ref[...]
    if relu:
        y = jnp.maximum(y, 0.0)
    o_ref[...] = y.astype(o_ref.dtype)


def _mm_shift_res_kernel(a_ref, w_ref, shift_ref, res_ref, o_ref, *, relu):
    acc = jnp.dot(a_ref[...], w_ref[...], preferred_element_type=jnp.float32)
    y = acc + shift_ref[...] + res_ref[...]
    if relu:
        y = jnp.maximum(y, 0.0)
    o_ref[...] = y.astype(o_ref.dtype)


def fused_conv_matmul(a, w_p, shift_p, n_out, *, res=None, relu,
                      out_dtype=jnp.float32, tm=512):
    """Fused (im2col) matmul + folded-BN shift + optional residual + optional ReLU.

    a:       (M, K)   activations (cast to bf16 here)
    w_p:     (Kp, Np) bf16 weights, BN scale folded in, zero-padded to 128 multiples
    shift_p: (1, Np)  f32 folded BN shift, zero-padded
    res:     optional (M, n_out) f32 residual
    returns  (M, n_out) out_dtype
    """
    M, K = a.shape
    Kp, Np = w_p.shape

    tm = min(tm, _round_up(M, 128))          # row tile, multiple of 128
    Mp = _round_up(M, tm)                    # padded row count -> grid = Mp // tm

    a_p = a
    if (Mp, Kp) != (M, K):
        a_p = jnp.pad(a, ((0, Mp - M), (0, Kp - K)))
    a_p = a_p.astype(jnp.bfloat16)

    in_specs = [
        pl.BlockSpec((tm, Kp), lambda i: (i, 0)),   # im2col activation rows
        pl.BlockSpec((Kp, Np), lambda i: (0, 0)),   # weights (resident across grid)
        pl.BlockSpec((1, Np), lambda i: (0, 0)),    # folded BN shift
    ]
    operands = [a_p, w_p, shift_p]

    if res is not None:
        res_p = res.astype(jnp.float32)
        if res_p.shape != (Mp, Np):
            res_p = jnp.pad(res_p, ((0, Mp - M), (0, Np - res_p.shape[1])))
        in_specs.append(pl.BlockSpec((tm, Np), lambda i: (i, 0)))
        operands.append(res_p)
        kernel = functools.partial(_mm_shift_res_kernel, relu=relu)
    else:
        kernel = functools.partial(_mm_shift_res_kernel, relu=relu) if False else \
            functools.partial(_mm_shift_kernel, relu=relu)

    # VMEM budget: double-buffered inputs + output tiles, with 2x margin.
    out_bytes = jnp.dtype(out_dtype).itemsize
    est = (2 * tm * Kp * 2              # bf16 activation tiles
           + 2 * Kp * Np * 2            # bf16 weights
           + 2 * Np * 4                 # shift
           + (2 * tm * Np * 4 if res is not None else 0)
           + 2 * tm * Np * out_bytes)   # output tiles
    vmem_limit = int(min(max(2 * est, 20 * 1024 * 1024), 60 * 1024 * 1024))

    out = pl.pallas_call(
        kernel,
        out_shape=jax.ShapeDtypeStruct((Mp, Np), out_dtype),
        grid=(Mp // tm,),
        in_specs=in_specs,
        out_specs=pl.BlockSpec((tm, Np), lambda i: (i, 0)),
        compiler_params=pltpu.CompilerParams(
            dimension_semantics=("parallel",),
            vmem_limit_bytes=vmem_limit,
        ),
    )(*operands)
    return out[:M, :n_out]


# ---------------------------------------------------------------------------
# Glue: im2col patch extraction (NHWC), one-time parameter prep, block wrapper
# ---------------------------------------------------------------------------
def extract_patches_3x3(x_nhwc, stride):
    """3x3 patches with padding=1. Returns ((N*Ho*Wo, 9*C), Ho, Wo)."""
    N, H, W, C = x_nhwc.shape
    Ho = (H + 2 - 3) // stride + 1
    Wo = (W + 2 - 3) // stride + 1
    xp = jnp.pad(x_nhwc, ((0, 0), (1, 1), (1, 1), (0, 0)))
    cols = []
    for ky in range(3):
        for kx in range(3):
            sl = xp[:, ky: ky + stride * (Ho - 1) + 1: stride,
                    kx: kx + stride * (Wo - 1) + 1: stride, :]
            cols.append(sl)
    patches = jnp.stack(cols, axis=3)                   # (N, Ho, Wo, 9, C)
    return patches.reshape(N * Ho * Wo, 9 * C), Ho, Wo


def prepare_block_params(params):
    """One-time prep (hoisted out of the hot path): fold BN into scale/shift,
    fold scale into the weights, reshape OIHW -> (K, Cout) im2col layout,
    zero-pad K and Cout to multiples of 128, cast weights to bf16."""
    def prep(w_oihw, bn):
        gamma, beta, mean, var = [jnp.asarray(t, jnp.float32) for t in bn]
        scale = gamma / jnp.sqrt(var + EPS)
        shift = beta - mean * scale
        O, I, kh, kw = w_oihw.shape
        K = kh * kw * I
        Kp = _round_up(K, 128)
        Np = _round_up(O, 128)
        w = jnp.transpose(jnp.asarray(w_oihw, jnp.float32), (2, 3, 1, 0)).reshape(K, O)
        w = w * scale[None, :]                                   # fold BN scale
        w_p = jnp.pad(w, ((0, Kp - K), (0, Np - O))).astype(jnp.bfloat16)
        shift_p = jnp.pad(shift, (0, Np - O)).reshape(1, Np)
        return w_p, shift_p

    prepped = {"Cout": int(params["w1"].shape[0])}
    prepped["w1"], prepped["shift1"] = prep(params["w1"], params["bn1"])
    prepped["w2"], prepped["shift2"] = prep(params["w2"], params["bn2"])
    if "w_ds" in params:
        prepped["w_ds"], prepped["shift_ds"] = prep(params["w_ds"], params["bn_ds"])
    return prepped


def basic_res_block(x_nchw, prepped, stride):
    """Forward pass of BasicResBlock. x_nchw: (N, Cin, H, W) -> (N, Cout, Ho, Wo)."""
    x = jnp.transpose(x_nchw, (0, 2, 3, 1)).astype(jnp.float32)   # NHWC
    N, H, W, Cin = x.shape
    Cout = prepped["Cout"]
    x_bf16 = x.astype(jnp.bfloat16)   # bf16 copy feeds the im2col / matmul path

    # --- identity / downsample path -------------------------------------
    if "w_ds" in prepped:
        xs = x_bf16[:, ::stride, ::stride, :]
        a_ds = xs.reshape(N * xs.shape[1] * xs.shape[2], Cin)
        identity = fused_conv_matmul(a_ds, prepped["w_ds"], prepped["shift_ds"],
                                     Cout, relu=False, out_dtype=jnp.float32)
    else:
        identity = x.reshape(N * H * W, Cin)

    # --- conv1 -> bn1 -> relu  (output kept bf16 for the conv2 im2col) ----
    a1, Ho, Wo = extract_patches_3x3(x_bf16, stride)               # (M, 9*Cin)
    out1 = fused_conv_matmul(a1, prepped["w1"], prepped["shift1"], Cout,
                             relu=True, out_dtype=jnp.bfloat16)

    # --- conv2 -> bn2 -> +identity -> relu --------------------------------
    a2, _, _ = extract_patches_3x3(out1.reshape(N, Ho, Wo, Cout), 1)  # (M, 9*Cout)
    out = fused_conv_matmul(a2, prepped["w2"], prepped["shift2"], Cout,
                            res=identity, relu=True, out_dtype=jnp.float32)

    return jnp.transpose(out.reshape(N, Ho, Wo, Cout), (0, 3, 1, 2))  # NCHW


# ---------------------------------------------------------------------------
# Pure-JAX reference (lax.conv, f32) for verification
# ---------------------------------------------------------------------------
def reference_block(x_nchw, params, stride):
    x = jnp.transpose(x_nchw, (0, 2, 3, 1)).astype(jnp.float32)
    dn = ("NHWC", "HWIO", "NHWC")
    Cin = x.shape[-1]
    Cout = params["w1"].shape[0]

    def conv(xx, w_oihw, s, pad):
        w = jnp.transpose(w_oihw, (2, 3, 1, 0))  # HWIO
        return jax.lax.conv_general_dilated(xx, w, (s, s), pad, dimension_numbers=dn)

    def bn(y, p):
        g, b, m, v = p
        return g * (y - m) / jnp.sqrt(v + EPS) + b

    if stride != 1 or Cin != Cout:
        identity = bn(conv(x, params["w_ds"], stride, ((0, 0), (0, 0))), params["bn_ds"])
    else:
        identity = x
    out = jax.nn.relu(bn(conv(x, params["w1"], stride, ((1, 1), (1, 1))), params["bn1"]))
    out = bn(conv(out, params["w2"], 1, ((1, 1), (1, 1))), params["bn2"])
    out = jax.nn.relu(out + identity)
    return jnp.transpose(out, (0, 3, 1, 2))


# ---------------------------------------------------------------------------
def make_params(key, in_channels, out_channels, stride):
    ks = jax.random.split(key, 12)

    def bn_params(k):
        k1, k2, k3, k4 = jax.random.split(k, 4)
        gamma = jax.random.uniform(k1, (out_channels,), jnp.float32, 0.5, 1.5)
        beta = jax.random.normal(k2, (out_channels,), jnp.float32) * 0.1
        mean = jax.random.normal(k3, (out_channels,), jnp.float32) * 0.1
        var = jax.random.uniform(k4, (out_channels,), jnp.float32, 0.5, 1.5)
        return (gamma, beta, mean, var)

    params = {
        "w1": jax.random.normal(ks[0], (out_channels, in_channels, 3, 3), jnp.float32) * 0.2,
        "bn1": bn_params(ks[1]),
        "w2": jax.random.normal(ks[2], (out_channels, out_channels, 3, 3), jnp.float32) * 0.2,
        "bn2": bn_params(ks[3]),
    }
    if stride != 1 or in_channels != out_channels:
        params["w_ds"] = jax.random.normal(ks[4], (out_channels, in_channels, 1, 1), jnp.float32) * 0.2
        params["bn_ds"] = bn_params(ks[5])
    return params


if __name__ == "__main__":
    key = jax.random.PRNGKey(0)
    k_x, k_p = jax.random.split(key)

    batch, in_channels, out_channels, spatial, stride = 2, 4, 8, 16, 2
    x = jax.random.normal(k_x, (batch, in_channels, spatial, spatial), jnp.float32)
    params = make_params(k_p, in_channels, out_channels, stride)

    prepped = prepare_block_params(params)          # one-time weight/BN prep
    out = basic_res_block(x, prepped, stride)
    out = jax.block_until_ready(out)

    ref = jax.block_until_ready(reference_block(x, params, stride))
    assert out.shape == ref.shape, (out.shape, ref.shape)
    # bf16 activations/weights on the MXU -> relaxed tolerance vs the f32 reference
    max_err = float(jnp.abs(out - ref).max())
    assert jnp.allclose(out, ref, rtol=2e-2, atol=5e-2), max_err

    print("KERNEL_OK")
</pallas_src>

<mosaic_0001>
module attributes {stable_mosaic.version = 11 : i64} {
  func.func @_mm_shift_kernel(%arg0: i32, %arg1: memref<128x128xbf16, #tpu.memory_space<vmem>>, %arg2: memref<128x128xbf16, #tpu.memory_space<vmem>>, %arg3: memref<1x128xf32, #tpu.memory_space<vmem>>, %arg4: memref<128x128xf32, #tpu.memory_space<vmem>>) attributes {dimension_semantics = [#tpu.dimension_semantics<parallel>], iteration_bounds = array<i64: 1>, scalar_prefetch = 0 : i64, scratch_operands = 0 : i64, tpu.core_type = #tpu.core_type<tc>, window_params = [{transform_indices = @transform_0, window_bounds = array<i64: 128, 128>}, {pipeline_mode = #tpu.pipeline_mode<synchronous>, transform_indices = @transform_1, window_bounds = array<i64: 128, 128>}, {pipeline_mode = #tpu.pipeline_mode<synchronous>, transform_indices = @transform_2, window_bounds = array<i64: 1, 128>}, {transform_indices = @transform_3, window_bounds = array<i64: 128, 128>}]} {
    %c0 = arith.constant 0 : index
    %c0_0 = arith.constant 0 : index
    %0 = vector.load %arg1[%c0, %c0_0] : memref<128x128xbf16, #tpu.memory_space<vmem>>, vector<128x128xbf16>
    %c0_1 = arith.constant 0 : index
    %c0_2 = arith.constant 0 : index
    %1 = vector.load %arg2[%c0_1, %c0_2] : memref<128x128xbf16, #tpu.memory_space<vmem>>, vector<128x128xbf16>
    %cst = arith.constant dense<0.000000e+00> : vector<128x128xf32>
    %2 = tpu.matmul %0, %1, %cst {dimension_numbers = #tpu.dot_dimension_numbers<[1], [0], [0], [1], [0, 0, 1, 1], [], []>} : vector<128x128xbf16>, vector<128x128xbf16>, vector<128x128xf32> -> vector<128x128xf32>
    %c0_3 = arith.constant 0 : index
    %c0_4 = arith.constant 0 : index
    %3 = vector.load %arg3[%c0_3, %c0_4] : memref<1x128xf32, #tpu.memory_space<vmem>>, vector<1x128xf32>
    %4 = vector.broadcast %3 : vector<1x128xf32> to vector<128x128xf32>
    %5 = arith.addf %2, %4 : vector<128x128xf32>
    %c0_5 = arith.constant 0 : index
    %c0_6 = arith.constant 0 : index
    %6 = vector.load %arg4[%c0_5, %c0_6] : memref<128x128xf32, #tpu.memory_space<vmem>>, vector<128x128xf32>
    tpu.vector_store %arg4[%c0_5, %c0_6], %5 {strides = array<i32>} : memref<128x128xf32, #tpu.memory_space<vmem>>, vector<128x128xf32>,
    return
  }
  func.func @transform_0(%arg0: i32) -> (i32, i32) {
    %c0_i32 = arith.constant 0 : i32
    %c0_i32_0 = arith.constant 0 : i32
    return %arg0, %c0_i32 : i32, i32
  }
  func.func @transform_1(%arg0: i32) -> (i32, i32) {
    %c0_i32 = arith.constant 0 : i32
    %c0_i32_0 = arith.constant 0 : i32
    %c0_i32_1 = arith.constant 0 : i32
    return %c0_i32, %c0_i32_0 : i32, i32
  }
  func.func @transform_2(%arg0: i32) -> (i32, i32) {
    %c0_i32 = arith.constant 0 : i32
    %c0_i32_0 = arith.constant 0 : i32
    %c0_i32_1 = arith.constant 0 : i32
    return %c0_i32, %c0_i32_0 : i32, i32
  }
  func.func @transform_3(%arg0: i32) -> (i32, i32) {
    %c0_i32 = arith.constant 0 : i32
    %c0_i32_0 = arith.constant 0 : i32
    return %arg0, %c0_i32 : i32, i32
  }
}

</mosaic_0001>

<bundles_post_ra>
// kernel: tpu_custom_call.1
= control target key start
LH: loop header
LB: loop body
LE: loop exit
PB: predicated region body
PF: predicated region fallthrough
CT: control target
= control target key end

     0   :  { %8 = vsyncpa [#allocation3], 0  ;;  %s552_s0 = inlined_call_operand.hbm [shape: bf16[128,128], index: 0, kind: input, shape index: {}]   ;;  %s553_s1 = inlined_call_operand.hbm [shape: bf16[128,128], index: 1, kind: input, shape index: {}]   ;;  %s554_s2 = inlined_call_operand.vmem [shape: f32[1,128], index: 2, kind: input, shape index: {}]   ;;  %s555_s3 = inlined_call_operand.hbm [shape: f32[128,128], index: 3, kind: output, shape index: {}]  }
   0x1   :  { %9 = vsyncpa [#allocation6], 0 }
   0x2   :  { %10 = vsyncpa [#allocation4], 0  ;;  %s486_s12 = smov [#allocation2]   ;;  %s414_s16 = scalar_lea.hbm %s552_s0, 1024 }
   0x3   :  { %s16_s13 = sshll.u32 %s486_s12, 4  ;;  %p415_p0 = scmp.ne.s32.totalorder %s552_s0, %s414_s16  ;;  %s17_s13 = int_to_ptr.vmem [resolvable:$true] %s16_s13 }
   0x4   :  { %p418_p1 = scmp.lt.u32.totalorder %s414_s16, %s552_s0 }
   0x6   :  { %p420_p2 = pnand %p418_p1, %p415_p0 }
   0x8   :  { %423 = shalt.err (!%p420_p2)
}
   0x9   :  { %s424_s21 = scalar_lea.vmem %s17_s13, 1024  ;;  %p429_p4 = scmp.lt.s32.totalorder %s17_s13, %s17_s13 }
   0xa   :  { %p425_p3 = scmp.ne.s32.totalorder %s17_s13, %s424_s21  ;;  %p430_p5 = scmp.lt.s32.totalorder %s424_s21, %s424_s21 }
   0xc   :  { %p431_p6 = por %p430_p5, %p429_p4 }
   0xe   :  { %p432_p7 = pnand %p431_p6, %p425_p3 }
  0x10   :  { %435 = shalt.err (!%p432_p7)
}
  0x11   :  { %s487_s22 = smov 64   ;;  %s488_s23 = smov 4  }
  0x12   :  { %22 = dma.hbm_to_vmem [thread:$0]  %s552_s0, 1024, %s17_s13, [#allocation3], %s487_s22, %s487_s22, %s488_s23  }
  0x13   :  { %s489_s26 = smov [#allocation5]   ;;  %s436_s30 = scalar_lea.hbm %s553_s1, 1024 }
  0x14   :  { %s28_s27 = sshll.u32 %s489_s26, 4  ;;  %p437_p8 = scmp.ne.s32.totalorder %s553_s1, %s436_s30  ;;  %s29_s27 = int_to_ptr.vmem [resolvable:$true] %s28_s27 }
  0x15   :  { %p440_p9 = scmp.lt.u32.totalorder %s436_s30, %s553_s1 }
  0x17   :  { %p442_p10 = pnand %p440_p9, %p437_p8 }
  0x19   :  { %445 = shalt.err (!%p442_p10)
}
  0x1a   :  { %s446_s8 = scalar_lea.vmem %s29_s27, 1024  ;;  %p451_p12 = scmp.lt.s32.totalorder %s29_s27, %s29_s27 }
  0x1b   :  { %p447_p11 = scmp.ne.s32.totalorder %s29_s27, %s446_s8  ;;  %p452_p13 = scmp.lt.s32.totalorder %s446_s8, %s446_s8 }
  0x1d   :  { %p453_p0 = por %p452_p13, %p451_p12 }
  0x1f   :  { %p454_p1 = pnand %p453_p0, %p447_p11 }
  0x21   :  { %457 = shalt.err (!%p454_p1)
}
  0x22   :  { %34 = dma.hbm_to_vmem [thread:$0]  %s553_s1, 1024, %s29_s27, [#allocation6], %s487_s22, %s487_s22, %s488_s23  }
  0x23   :  { %480 = dma.done.wait [#allocation3], 1024  }
  0x24   :  { %481 = vsyncadd [#allocation3], 4294966272 }
  0x25   :  { %482 = dma.done.wait [#allocation6], 1024  }
  0x26   :  { %483 = vsyncadd [#allocation6], 4294966272  ;;  %v398_v0 = vld [vmem:[#allocation5] sm:$0xff]   ;;  %v399_v1 = vld [vmem:[#allocation5 + $0x8] sm:$0xff]  }
  0x27   :  { %343 = vmatprep.subr.bf16.mxu0 %v398_v0  ;;  %375 = vmatprep.subr.bf16.mxu1 %v398_v0  ;;  %v400_v2 = vld [vmem:[#allocation5 + $0x10] sm:$0xff]   ;;  %v401_v3 = vld [vmem:[#allocation5 + $0x18] sm:$0xff]   ;;  %v406_v4 = vld [vmem:[#allocation2] sm:$0xff]  }
  0x28   :  { %344 = vmatpush3.bf16.msra.mxu0 %v398_v0  ;;  %383 = vmatpush3.bf16.msra.mxu1 %v398_v0  ;;  %v407_v5 = vld [vmem:[#allocation2 + $0x20] sm:$0xff]   ;;  %v403_v7 = vld [vmem:[#allocation5 + $0x28] sm:$0xff]   ;;  %v404_v8 = vld [vmem:[#allocation5 + $0x30] sm:$0xff]  }
  0x29   :  { %345 = vmatprep.subr.bf16.mxu0 %v399_v1  ;;  %376 = vmatprep.subr.bf16.mxu1 %v399_v1  ;;  %v402_v6 = vld [vmem:[#allocation5 + $0x20] sm:$0xff]   ;;  %v405_v9 = vld [vmem:[#allocation5 + $0x38] sm:$0xff]   ;;  %v408_v10 = vld [vmem:[#allocation2 + $0x8] sm:$0xff]  }
  0x2a   :  { %359 = vmatprep.mubr.bf16.mxu0 %v406_v4  ;;  %367 = vmatprep.mubr.bf16.mxu1 %v407_v5  ;;  %v409_v11 = vld [vmem:[#allocation2 + $0x28] sm:$0xff]   ;;  %v410_v12 = vld [vmem:[#allocation2 + $0x10] sm:$0xff]   ;;  %v412_v14 = vld [vmem:[#allocation2 + $0x18] sm:$0xff]  }
  0x2b   :  { %v411_v13 = vld [vmem:[#allocation2 + $0x30] sm:$0xff]   ;;  %v413_v15 = vld [vmem:[#allocation2 + $0x38] sm:$0xff]   ;;  %v310_v16 = vld [vmem:[%s554_s2] ss:$0 sm:$0xff]  ;;  %s490_s2 = smov [#allocation7]  }
  0x2c   :  { %346 = vmatpush3.bf16.msra.mxu0 %v399_v1  ;;  %384 = vmatpush3.bf16.msra.mxu1 %v399_v1  ;;  %s297_s11 = sshll.u32 %s490_s2, 4  ;;  %s298_s11 = int_to_ptr.vmem [resolvable:$true] %s297_s11 }
  0x2d   :  { %347 = vmatprep.subr.bf16.mxu0 %v400_v2  ;;  %377 = vmatprep.subr.bf16.mxu1 %v400_v2  ;;  %s458_s12 = scalar_lea.vmem %s298_s11, 2048  ;;  %p463_p3 = scmp.lt.s32.totalorder %s298_s11, %s298_s11 }
  0x2e   :  { %p459_p2 = scmp.ne.s32.totalorder %s298_s11, %s458_s12  ;;  %p464_p4 = scmp.lt.s32.totalorder %s458_s12, %s458_s12 }
  0x30   :  { %348 = vmatpush3.bf16.msra.mxu0 %v400_v2  ;;  %385 = vmatpush3.bf16.msra.mxu1 %v400_v2  ;;  %p465_p5 = por %p464_p4, %p463_p3 }
  0x31   :  { %349 = vmatprep.subr.bf16.mxu0 %v401_v3  ;;  %378 = vmatprep.subr.bf16.mxu1 %v401_v3 }
  0x32   :  { %p466_p6 = pnand %p465_p5, %p459_p2 }
  0x34   :  { %350 = vmatpush3.bf16.msra.mxu0 %v401_v3  ;;  %386 = vmatpush3.bf16.msra.mxu1 %v401_v3 }
  0x35   :  { %351 = vmatprep.subr.bf16.mxu0 %v402_v6  ;;  %379 = vmatprep.subr.bf16.mxu1 %v402_v6 }
  0x38   :  { %352 = vmatpush3.bf16.msra.mxu0 %v402_v6  ;;  %387 = vmatpush3.bf16.msra.mxu1 %v402_v6 }
  0x39   :  { %353 = vmatprep.subr.bf16.mxu0 %v403_v7  ;;  %380 = vmatprep.subr.bf16.mxu1 %v403_v7 }
  0x3c   :  { %354 = vmatpush3.bf16.msra.mxu0 %v403_v7  ;;  %388 = vmatpush3.bf16.msra.mxu1 %v403_v7 }
  0x3d   :  { %355 = vmatprep.subr.bf16.mxu0 %v404_v8  ;;  %381 = vmatprep.subr.bf16.mxu1 %v404_v8 }
  0x40   :  { %356 = vmatpush3.bf16.msra.mxu0 %v404_v8  ;;  %389 = vmatpush3.bf16.msra.mxu1 %v404_v8 }
  0x41   :  { %357 = vmatprep.subr.bf16.mxu0 %v405_v9  ;;  %382 = vmatprep.subr.bf16.mxu1 %v405_v9 }
  0x44   :  { %358 = vmatpush3.bf16.msra.mxu0 %v405_v9  ;;  %390 = vmatpush3.bf16.msra.mxu1 %v405_v9 }
  0x47   :  { %360 = vmatmul.mubr.bf16.vlgmr.msra.gmra.mrb[0].mxu0 %v408_v10  ;;  %368 = vmatmul.mubr.bf16.vlgmr.msra.gmra.mrb[0].mxu1 %v409_v11 }
  0x48   :  { %363 = vmatprep.mubr.bf16.mxu0 %v410_v12  ;;  %371 = vmatprep.mubr.bf16.mxu1 %v411_v13 }
  0x4f   :  { %364 = vmatmul.mubr.bf16.gmra.mrb[4].mxu0 %v412_v14  ;;  %372 = vmatmul.mubr.bf16.gmra.mrb[4].mxu1 %v413_v15 }
 0x11a   :  { %v361_v17 = vpop.f32.mrb[0].mxu0  ;;  %v369_v18 = vpop.f32.mrb[0].mxu1 }
 0x11b   :  { %v222_v19 = vadd.f32 %v361_v17, %v310_v16  ;;  %v254_v20 = vadd.f32 %v369_v18, %v310_v16  ;;  %v213_v21 = vpop.f32.mrb[1].mxu0  ;;  %v245_v22 = vpop.f32.mrb[1].mxu1 }
 0x11c   :  { %v214_v23 = vadd.f32 %v310_v16, %v213_v21  ;;  %v246_v24 = vadd.f32 %v310_v16, %v245_v22  ;;  %v362_v25 = vpop.f32.mrb[2].mxu0  ;;  %v370_v26 = vpop.f32.mrb[2].mxu1 }
 0x11d   :  { %278 = vst [vmem:[#allocation7 + $0x10] sm:$0xff] %v222_v19  ;;  %286 = vst [vmem:[#allocation7 + $0x50] sm:$0xff] %v254_v20  ;;  %v225_v27 = vadd.f32 %v362_v25, %v310_v16  ;;  %v257_v28 = vadd.f32 %v370_v26, %v310_v16  ;;  %v216_v29 = vpop.f32.mrb[3].mxu0  ;;  %v248_v30 = vpop.f32.mrb[3].mxu1 }
 0x11e   :  { %276 = vst [vmem:[#allocation7] sm:$0xff] %v214_v23  ;;  %284 = vst [vmem:[#allocation7 + $0x40] sm:$0xff] %v246_v24  ;;  %v217_v31 = vadd.f32 %v310_v16, %v216_v29  ;;  %v249_v32 = vadd.f32 %v310_v16, %v248_v30 }
 0x11f   :  { %279 = vst [vmem:[#allocation7 + $0x18] sm:$0xff] %v225_v27  ;;  %287 = vst [vmem:[#allocation7 + $0x58] sm:$0xff] %v257_v28 }
 0x120   :  { %277 = vst [vmem:[#allocation7 + $0x8] sm:$0xff] %v217_v31  ;;  %285 = vst [vmem:[#allocation7 + $0x48] sm:$0xff] %v249_v32 }
 0x122   :  { %v365_v33 = vpop.f32.mrb[4].mxu0  ;;  %v373_v34 = vpop.f32.mrb[4].mxu1 }
 0x123   :  { %v238_v35 = vadd.f32 %v365_v33, %v310_v16  ;;  %v270_v36 = vadd.f32 %v373_v34, %v310_v16  ;;  %v229_v37 = vpop.f32.mrb[5].mxu0  ;;  %v261_v38 = vpop.f32.mrb[5].mxu1 }
 0x124   :  { %v230_v39 = vadd.f32 %v310_v16, %v229_v37  ;;  %v262_v40 = vadd.f32 %v310_v16, %v261_v38  ;;  %v366_v41 = vpop.f32.mrb[6].mxu0  ;;  %v374_v42 = vpop.f32.mrb[6].mxu1 }
 0x125   :  { %282 = vst [vmem:[#allocation7 + $0x30] sm:$0xff] %v238_v35  ;;  %290 = vst [vmem:[#allocation7 + $0x70] sm:$0xff] %v270_v36  ;;  %v241_v43 = vadd.f32 %v366_v41, %v310_v16  ;;  %v273_v44 = vadd.f32 %v374_v42, %v310_v16  ;;  %v232_v45 = vpop.f32.mrb[7].mxu0  ;;  %v264_v46 = vpop.f32.mrb[7].mxu1 }
 0x126   :  { %280 = vst [vmem:[#allocation7 + $0x20] sm:$0xff] %v230_v39  ;;  %288 = vst [vmem:[#allocation7 + $0x60] sm:$0xff] %v262_v40  ;;  %v233_v47 = vadd.f32 %v310_v16, %v232_v45  ;;  %v265_v48 = vadd.f32 %v310_v16, %v264_v46 }
 0x127   :  { %283 = vst [vmem:[#allocation7 + $0x38] sm:$0xff] %v241_v43  ;;  %291 = vst [vmem:[#allocation7 + $0x78] sm:$0xff] %v273_v44 }
 0x128   :  { %281 = vst [vmem:[#allocation7 + $0x28] sm:$0xff] %v233_v47  ;;  %289 = vst [vmem:[#allocation7 + $0x68] sm:$0xff] %v265_v48 }
 0x129   :  { %469 = shalt.err (!%p466_p6)
}
 0x12a   :  { %s470_s15 = scalar_lea.hbm %s555_s3, 2048 }
 0x12b   :  { %p471_p7 = scmp.ne.s32.totalorder %s555_s3, %s470_s15  ;;  %p474_p8 = scmp.lt.u32.totalorder %s470_s15, %s555_s3 }
 0x12d   :  { %p476_p9 = pnand %p474_p8, %p471_p7 }
 0x12f   :  { %479 = shalt.err (!%p476_p9)
}
 0x130   :  { %s491_s20 = smov 128   ;;  %s492_s21 = smov 8  }
 0x131   :  { %303 = dma.vmem_to_hbm [thread:$0]  %s298_s11, 2048, %s555_s3, [#allocation4], %s491_s20, %s491_s20, %s492_s21  }
 0x132   :  { %484 = dma.done.wait [#allocation4], 2048  }
 0x133   :  { %485 = vsyncadd [#allocation4], 4294965248 }
 0x134   :  { %307 = vsyncpa [#allocation3], 1 }
 0x135   :  { %308 = vsyncpa [#allocation6], 1 }
 0x136   :  { %309 = vsyncpa [#allocation4], 1 }

</bundles_post_ra>
